<compile_context>
chip_gen: v5e
topology: v5e:2x2
jax: 0.10.0
libtpu: 0.0.40
codegen_flags: <defaults>
</compile_context>

<pallas_src>
import jax
import jax.numpy as jnp
from jax.experimental import pallas as pl
from jax.experimental.pallas import tpu as pltpu


# ---------------------------------------------------------------------------
# Path 1: zero-copy identity (primary).
# ---------------------------------------------------------------------------
def _alias_identity_kernel(fa_hbm_ref, o_hbm_ref):
    # Output aliases the input HBM buffer (input_output_aliases={0: 0}) and
    # both refs stay in HBM (memory_space=pl.ANY): the result is already in
    # place, so there is nothing to DMA and nothing to compute.
    del fa_hbm_ref, o_hbm_ref


def fixed_feature_forward(feature_array):
    """FixedFeatureArchCore.forward(): return the fixed feature buffer.

    Aliased no-op pallas_call — the kernel moves zero bytes.
    """
    return pl.pallas_call(
        _alias_identity_kernel,
        out_shape=jax.ShapeDtypeStruct(feature_array.shape, feature_array.dtype),
        in_specs=[pl.BlockSpec(memory_space=pl.ANY)],
        out_specs=pl.BlockSpec(memory_space=pl.ANY),
        input_output_aliases={0: 0},
        cost_estimate=pl.CostEstimate(flops=0, transcendentals=0, bytes_accessed=0),
    )(feature_array)


# ---------------------------------------------------------------------------
# Path 2: materializing tiled copy (only if a fresh buffer is required).
# ---------------------------------------------------------------------------
def _copy_kernel(src_ref, dst_ref):
    dst_ref[...] = src_ref[...]


def _lane_dense_view(n_rows, n_cols):
    """Pick a (rows, lanes) view of the contiguous table with a lane-dense
    (multiple-of-128) last dimension whenever possible."""
    if n_cols >= 128 and n_cols % 128 == 0:
        return n_rows, n_cols
    total = n_rows * n_cols
    for lanes in (1024, 512, 256, 128):
        if total % lanes == 0:
            return total // lanes, lanes
    # Odd total: keep the original layout (masked stores, still correct).
    return n_rows, n_cols


def _pick_row_block(rows, lanes, dtype_bytes, tile_budget_bytes):
    """Largest multiple-of-8 row block whose tile fits the per-buffer budget.
    Used with a cdiv grid, so it need not divide `rows`."""
    if rows <= 8:
        return rows  # block dim == full array dim is always legal
    max_rows = max(8, tile_budget_bytes // max(1, lanes * dtype_bytes))
    bn = min(rows, max_rows)
    bn = max(8, (bn // 8) * 8)
    return bn


def fixed_feature_forward_materialize(feature_array, *, tile_budget_bytes=8 << 20):
    """Same semantics as forward(), but materializes a fresh copy of the table
    via a lane-dense, cdiv-tiled, double-buffered VMEM copy."""
    N, F = feature_array.shape
    dtype = feature_array.dtype
    itemsize = jnp.dtype(dtype).itemsize

    rows, lanes = _lane_dense_view(N, F)
    x = feature_array.reshape(rows, lanes)  # free: row-major contiguous
    bn = _pick_row_block(rows, lanes, itemsize, tile_budget_bytes)
    grid = (pl.cdiv(rows, bn),)

    nbytes = rows * lanes * itemsize
    out_flat = pl.pallas_call(
        _copy_kernel,
        out_shape=jax.ShapeDtypeStruct((rows, lanes), dtype),
        grid=grid,
        in_specs=[pl.BlockSpec((bn, lanes), lambda i: (i, 0))],
        out_specs=pl.BlockSpec((bn, lanes), lambda i: (i, 0)),
        compiler_params=pltpu.CompilerParams(
            dimension_semantics=("parallel",),
            # 4 double-buffered in/out tiles of <= tile_budget stay under this;
            # 40 MiB is below physical VMEM on v5e/v6e (128 MiB) and v7x (64 MiB).
            vmem_limit_bytes=40 << 20,
        ),
        cost_estimate=pl.CostEstimate(
            flops=0, transcendentals=0, bytes_accessed=2 * nbytes),
    )(x)
    return out_flat.reshape(N, F)


def _reference(feature_array):
    # PyTorch forward() just returns the buffer.
    return feature_array


if __name__ == "__main__":
    key = jax.random.PRNGKey(0)
    k0, k1 = jax.random.split(key)

    # Small shapes consistent with the module: fixed (total_case, out_features) tables.
    fa_small = jax.random.normal(k0, (16, 32), dtype=jnp.float32)      # F not lane-multiple
    fa_mid = jax.random.normal(k1, (136, 96), dtype=jnp.float32)       # exercises cdiv tail

    for fa in (fa_small, fa_mid):
        ref = _reference(fa)

        out_alias = jax.block_until_ready(fixed_feature_forward(fa))
        assert out_alias.shape == fa.shape and out_alias.dtype == fa.dtype
        assert jnp.array_equal(out_alias, ref)

        out_copy = jax.block_until_ready(fixed_feature_forward_materialize(fa))
        assert out_copy.shape == fa.shape and out_copy.dtype == fa.dtype
        assert jnp.array_equal(out_copy, ref)

    print("KERNEL_OK")
</pallas_src>

<mosaic_0001>
module attributes {stable_mosaic.version = 11 : i64} {
  func.func @_alias_identity_kernel(%arg0: memref<16x32xf32, #tpu.memory_space<any>>, %arg1: memref<16x32xf32, #tpu.memory_space<any>>) attributes {dimension_semantics = [], scalar_prefetch = 0 : i64, scratch_operands = 0 : i64, tpu.core_type = #tpu.core_type<tc>} {
    return
  }
}

</mosaic_0001>

<bundles_post_ra>
// kernel: tpu_custom_call.1
= control target key start
LH: loop header
LB: loop body
LE: loop exit
PB: predicated region body
PF: predicated region fallthrough
CT: control target
= control target key end

     0   :  { %s16_s0 = inlined_call_operand.hbm [shape: f32[16,32], index: 0, kind: input, shape index: {}, may-alias: {0,1}]   ;;  %s17_s1 = inlined_call_operand.hbm [shape: f32[16,32], index: 1, kind: output, shape index: {}, may-alias: {0,1}]  }

</bundles_post_ra>
